<compile_context>
chip_gen: v7x
topology: tpu7x:2x2x1
jax: 0.10.0
libtpu: 0.0.40
codegen_flags: <defaults>
</compile_context>

<pallas_src>
import functools
import math

import jax
import jax.numpy as jnp
from jax.experimental import pallas as pl
from jax.experimental.pallas import tpu as pltpu


def _round_up(x: int, m: int) -> int:
    return ((x + m - 1) // m) * m


# --------------------------------------------------------------------------
# Kernels
# --------------------------------------------------------------------------
def _gate_kernel(w1t_ref, w2t_ref, w_ref):
    """W = tanh(W1) * sigmoid(W2) on already-transposed (K, N) weight tiles."""
    w1 = w1t_ref[...]
    w2 = w2t_ref[...]
    # sigmoid(x) == 0.5 * (tanh(0.5 * x) + 1): a single EUP (tanh) op per
    # element instead of exp + divide.  Mathematically exact.
    gate = 0.5 * (jnp.tanh(0.5 * w2) + 1.0)
    w_ref[...] = (jnp.tanh(w1) * gate).astype(w_ref.dtype)


def _matmul_kernel(x_ref, w_ref, o_ref, *, cast_x_to):
    """One (batch, N) tile: y = x @ W  (W pre-gated, pre-transposed)."""
    x = x_ref[...]
    if cast_x_to is not None:
        x = x.astype(cast_x_to)          # bf16 feed to the MXU
    o_ref[...] = jnp.dot(
        x, w_ref[...], preferred_element_type=jnp.float32
    ).astype(o_ref.dtype)


# --------------------------------------------------------------------------
# Wrapper
# --------------------------------------------------------------------------
def neural_accumulator_forward(x, w1, w2, *, compute_dtype=None):
    """x: (B, in_dim); w1, w2: (out_dim, in_dim)  ->  (B, out_dim)."""
    batch, in_dim = x.shape
    out_dim = w1.shape[0]
    assert w1.shape == (out_dim, in_dim) and w2.shape == (out_dim, in_dim)

    w_dtype = jnp.float32 if compute_dtype is None else jnp.dtype(compute_dtype)
    w_itemsize = jnp.dtype(w_dtype).itemsize
    x_itemsize = jnp.dtype(x.dtype).itemsize

    # Lane-dense / MXU-friendly padding of the contraction dim.
    kp = _round_up(in_dim, 128)

    # Conservative VMEM budget (safe vs. v5e 16 MiB .. v7x 32 MiB scoped
    # defaults, leaving room for double-buffering + compiler scratch).
    vmem_budget = 8 * 1024 * 1024

    # --- N (out_dim) tile: largest lane multiple whose double-buffered
    # weight tile stays under half the budget. -------------------------------
    tn = _round_up(out_dim, 128)
    while tn > 128 and 2 * kp * tn * w_itemsize > vmem_budget // 2:
        tn = _round_up(tn // 2, 128)
    npad = _round_up(out_dim, tn)

    # --- Batch tile: biggest multiple of 8 (sublane) such that the
    # double-buffered x / y tiles + weight tile fit the budget. --------------
    w_tile_bytes = 2 * kp * tn * w_itemsize
    row_bytes = 2 * (kp * x_itemsize + tn * x_itemsize) + kp * w_itemsize
    max_tb = max(8, ((vmem_budget - w_tile_bytes) // max(row_bytes, 1)) // 8 * 8)
    tb = min(_round_up(batch, 8), 512, max_tb)
    bp = _round_up(batch, tb)

    # Transpose + zero-pad ONCE in the wrapper (kills any in-kernel .T).
    # tanh(0) * sigmoid(0) == 0, so zero-padded weight entries gate to 0 and
    # zero-padded x columns contribute nothing: padding is exact.
    w1t = jnp.pad(w1.T, ((0, kp - in_dim), (0, npad - out_dim)))
    w2t = jnp.pad(w2.T, ((0, kp - in_dim), (0, npad - out_dim)))
    xp = jnp.pad(x, ((0, bp - batch), (0, kp - in_dim)))

    grid_b = bp // tb
    grid_n = npad // tn

    # (1) Gate the weights once (not per batch tile), written directly in the
    #     matmul compute dtype.  Tiled over N with the same tiles the matmul
    #     consumes, so a single tile is always VMEM-safe.
    w_gated = pl.pallas_call(
        _gate_kernel,
        out_shape=jax.ShapeDtypeStruct((kp, npad), w_dtype),
        grid_spec=pltpu.PrefetchScalarGridSpec(
            num_scalar_prefetch=0,
            grid=(grid_n,),
            in_specs=[
                pl.BlockSpec((kp, tn), lambda j: (0, j)),
                pl.BlockSpec((kp, tn), lambda j: (0, j)),
            ],
            out_specs=pl.BlockSpec((kp, tn), lambda j: (0, j)),
        ),
        compiler_params=pltpu.CompilerParams(
            dimension_semantics=("parallel",),
        ),
    )(w1t, w2t)

    # (2) (batch, N)-tiled matmul.  x tile is resident across the inner N
    #     sweep; for grid_n == 1 the gated weight is resident across the
    #     whole grid.  Both axes are independent -> "parallel" (megacore).
    cast_x_to = None
    if compute_dtype is not None and jnp.dtype(x.dtype) != jnp.dtype(compute_dtype):
        cast_x_to = jnp.dtype(compute_dtype)
    kernel = functools.partial(_matmul_kernel, cast_x_to=cast_x_to)

    yp = pl.pallas_call(
        kernel,
        out_shape=jax.ShapeDtypeStruct((bp, npad), x.dtype),
        grid_spec=pltpu.PrefetchScalarGridSpec(
            num_scalar_prefetch=0,
            grid=(grid_b, grid_n),
            in_specs=[
                pl.BlockSpec((tb, kp), lambda i, j: (i, 0)),   # x tile (resident over j)
                pl.BlockSpec((kp, tn), lambda i, j: (0, j)),   # gated weight tile
            ],
            out_specs=pl.BlockSpec((tb, tn), lambda i, j: (i, j)),
        ),
        compiler_params=pltpu.CompilerParams(
            dimension_semantics=("parallel", "parallel"),
        ),
    )(xp, w_gated)

    return yp[:batch, :out_dim]


# --------------------------------------------------------------------------
# Reference + init matching the PyTorch module
# --------------------------------------------------------------------------
def _xavier_uniform(key, shape, gain):
    # shape = (out_dim, in_dim): fan_in = in_dim, fan_out = out_dim
    fan_out, fan_in = shape
    bound = gain * math.sqrt(6.0 / (fan_in + fan_out))
    return jax.random.uniform(
        key, shape, dtype=jnp.float32, minval=-bound, maxval=bound
    )


def neural_accumulator_ref(x, w1, w2):
    w = jnp.tanh(w1) * jax.nn.sigmoid(w2)
    return x @ w.T


if __name__ == "__main__":
    key = jax.random.PRNGKey(0)
    k_x, k_w1, k_w2, k_x2 = jax.random.split(key, 4)

    # --- Small shapes consistent with the module --------------------------
    batch, in_dim, out_dim = 8, 32, 16
    x = jax.random.normal(k_x, (batch, in_dim), dtype=jnp.float32)
    # Deterministic parameter init matching reset_weights():
    # xavier_uniform with gain('tanh') = 5/3 for W1, gain('sigmoid') = 1 for W2.
    w1 = _xavier_uniform(k_w1, (out_dim, in_dim), gain=5.0 / 3.0)
    w2 = _xavier_uniform(k_w2, (out_dim, in_dim), gain=1.0)

    y = neural_accumulator_forward(x, w1, w2)
    jax.block_until_ready(y)
    y_ref = neural_accumulator_ref(x, w1, w2)
    assert y.shape == (batch, out_dim)
    assert jnp.allclose(y, y_ref, atol=1e-4, rtol=1e-4)

    # --- Exercise multi-tile batch path + padding (still cheap) ------------
    b2, i2, o2 = 520, 48, 24
    x2 = jax.random.normal(k_x2, (b2, i2), dtype=jnp.float32)
    w1b = _xavier_uniform(k_w1, (o2, i2), gain=5.0 / 3.0)
    w2b = _xavier_uniform(k_w2, (o2, i2), gain=1.0)
    y2 = neural_accumulator_forward(x2, w1b, w2b)
    jax.block_until_ready(y2)
    y2_ref = neural_accumulator_ref(x2, w1b, w2b)
    assert y2.shape == (b2, o2)
    assert jnp.allclose(y2, y2_ref, atol=1e-4, rtol=1e-4)

    # --- Optional bf16 MXU feed (f32 accumulation) -------------------------
    y3 = neural_accumulator_forward(x2, w1b, w2b, compute_dtype=jnp.bfloat16)
    jax.block_until_ready(y3)
    assert jnp.allclose(y3, y2_ref, atol=3e-2, rtol=3e-2)

    print("KERNEL_OK")
</pallas_src>

<mosaic_0001>
module attributes {stable_mosaic.version = 11 : i64} {
  func.func @_gate_kernel(%arg0: i32, %arg1: memref<128x128xf32, #tpu.memory_space<vmem>>, %arg2: memref<128x128xf32, #tpu.memory_space<vmem>>, %arg3: memref<128x128xf32, #tpu.memory_space<vmem>>) attributes {dimension_semantics = [#tpu.dimension_semantics<parallel>], iteration_bounds = array<i64: 1>, scalar_prefetch = 0 : i64, scratch_operands = 0 : i64, tpu.core_type = #tpu.core_type<tc>, window_params = [{transform_indices = @transform_0, window_bounds = array<i64: 128, 128>}, {transform_indices = @transform_1, window_bounds = array<i64: 128, 128>}, {transform_indices = @transform_2, window_bounds = array<i64: 128, 128>}]} {
    %c0 = arith.constant 0 : index
    %c0_0 = arith.constant 0 : index
    %0 = vector.load %arg1[%c0, %c0_0] : memref<128x128xf32, #tpu.memory_space<vmem>>, vector<128x128xf32>
    %c0_1 = arith.constant 0 : index
    %c0_2 = arith.constant 0 : index
    %1 = vector.load %arg2[%c0_1, %c0_2] : memref<128x128xf32, #tpu.memory_space<vmem>>, vector<128x128xf32>
    %cst = arith.constant 5.000000e-01 : f32
    %2 = vector.broadcast %cst : f32 to vector<128x128xf32>
    %3 = arith.mulf %2, %1 : vector<128x128xf32>
    %4 = math.tanh %3 : vector<128x128xf32>
    %cst_3 = arith.constant 1.000000e+00 : f32
    %5 = vector.broadcast %cst_3 : f32 to vector<128x128xf32>
    %6 = arith.addf %4, %5 : vector<128x128xf32>
    %cst_4 = arith.constant 5.000000e-01 : f32
    %7 = vector.broadcast %cst_4 : f32 to vector<128x128xf32>
    %8 = arith.mulf %7, %6 : vector<128x128xf32>
    %9 = math.tanh %0 : vector<128x128xf32>
    %10 = arith.mulf %9, %8 : vector<128x128xf32>
    %c0_5 = arith.constant 0 : index
    %c0_6 = arith.constant 0 : index
    %11 = vector.load %arg3[%c0_5, %c0_6] : memref<128x128xf32, #tpu.memory_space<vmem>>, vector<128x128xf32>
    tpu.vector_store %arg3[%c0_5, %c0_6], %10 {strides = array<i32>} : memref<128x128xf32, #tpu.memory_space<vmem>>, vector<128x128xf32>,
    return
  }
  func.func @transform_0(%arg0: i32) -> (i32, i32) {
    %c0_i32 = arith.constant 0 : i32
    %c0_i32_0 = arith.constant 0 : i32
    return %c0_i32, %arg0 : i32, i32
  }
  func.func @transform_1(%arg0: i32) -> (i32, i32) {
    %c0_i32 = arith.constant 0 : i32
    %c0_i32_0 = arith.constant 0 : i32
    return %c0_i32, %arg0 : i32, i32
  }
  func.func @transform_2(%arg0: i32) -> (i32, i32) {
    %c0_i32 = arith.constant 0 : i32
    %c0_i32_0 = arith.constant 0 : i32
    return %c0_i32, %arg0 : i32, i32
  }
}

</mosaic_0001>

<bundles_post_ra>
// kernel: tpu_custom_call.1
= control target key start
LH: loop header
LB: loop body
LE: loop exit
PB: predicated region body
PF: predicated region fallthrough
CT: control target
= control target key end

     0   :  { %7 = vsyncpa [#allocation3], 0  ;;  %s408_s0 = inlined_call_operand.hbm [shape: f32[128,128], index: 0, kind: input, shape index: {}]   ;;  %s409_s1 = inlined_call_operand.hbm [shape: f32[128,128], index: 1, kind: input, shape index: {}]   ;;  %s410_s2 = inlined_call_operand.hbm [shape: f32[128,128], index: 2, kind: output, shape index: {}]  }
   0x1   :  { %8 = vsyncpa [#allocation6], 0 }
   0x2   :  { %9 = vsyncpa [#allocation4], 0  ;;  %s343_s9 = smov [#allocation2]   ;;  %s271_s13 = scalar_lea.hbm %s408_s0, 2048 }
   0x3   :  { %s15_s10 = sshll.u32 %s343_s9, 4  ;;  %p272_p0 = scmp.ne.s32.totalorder %s408_s0, %s271_s13  ;;  %s16_s10 = int_to_ptr.vmem [resolvable:$true] %s15_s10 }
   0x4   :  { %p275_p1 = scmp.lt.u32.totalorder %s271_s13, %s408_s0 }
   0x6   :  { %p277_p2 = pnand %p275_p1, %p272_p0 }
   0x8   :  { %280 = shalt.err (!%p277_p2)
}
   0x9   :  { %s281_s18 = scalar_lea.vmem %s16_s10, 2048  ;;  %p286_p4 = scmp.lt.s32.totalorder %s16_s10, %s16_s10 }
   0xa   :  { %p282_p3 = scmp.ne.s32.totalorder %s16_s10, %s281_s18  ;;  %p287_p5 = scmp.lt.s32.totalorder %s281_s18, %s281_s18 }
   0xc   :  { %p288_p6 = por %p287_p5, %p286_p4 }
   0xe   :  { %p289_p7 = pnand %p288_p6, %p282_p3 }
  0x10   :  { %292 = shalt.err (!%p289_p7)
}
  0x11   :  { %s344_s19 = smov 128   ;;  %s345_s20 = smov 8  }
  0x12   :  { %21 = dma.hbm_to_vmem [thread:$0]  %s408_s0, 2048, %s16_s10, [#allocation3], %s344_s19, %s344_s19, %s345_s20  }
  0x13   :  { %s346_s23 = smov [#allocation5]   ;;  %s293_s27 = scalar_lea.hbm %s409_s1, 2048 }
  0x14   :  { %s27_s24 = sshll.u32 %s346_s23, 4  ;;  %p294_p8 = scmp.ne.s32.totalorder %s409_s1, %s293_s27  ;;  %s28_s24 = int_to_ptr.vmem [resolvable:$true] %s27_s24 }
  0x15   :  { %p297_p9 = scmp.lt.u32.totalorder %s293_s27, %s409_s1 }
  0x17   :  { %p299_p10 = pnand %p297_p9, %p294_p8 }
  0x19   :  { %302 = shalt.err (!%p299_p10)
}
  0x1a   :  { %s303_s4 = scalar_lea.vmem %s28_s24, 2048  ;;  %p308_p12 = scmp.lt.s32.totalorder %s28_s24, %s28_s24 }
  0x1b   :  { %p304_p11 = scmp.ne.s32.totalorder %s28_s24, %s303_s4  ;;  %p309_p13 = scmp.lt.s32.totalorder %s303_s4, %s303_s4 }
  0x1d   :  { %p310_p0 = por %p309_p13, %p308_p12 }
  0x1f   :  { %p311_p1 = pnand %p310_p0, %p304_p11 }
  0x21   :  { %314 = shalt.err (!%p311_p1)
}
  0x22   :  { %33 = dma.hbm_to_vmem [thread:$0]  %s409_s1, 2048, %s28_s24, [#allocation6], %s344_s19, %s344_s19, %s345_s20  }
  0x23   :  { %337 = dma.done.wait [#allocation3], 2048  }
  0x24   :  { %338 = vsyncadd [#allocation3], 4294965248 }
  0x25   :  { %339 = dma.done.wait [#allocation6], 2048  }
  0x26   :  { %340 = vsyncadd [#allocation6], 4294965248  ;;  %v40_v0 = vld [vmem:[#allocation2] sm:$0xff]  ;;  %v41_v2 = vld [vmem:[#allocation2 + $0x8] sm:$0xff]  ;;  %s347_s1 = smov [#allocation7]  }
  0x27   :  { %v56_v1 = vld [vmem:[#allocation5] sm:$0xff]  ;;  %207 = vtanh.f32 %v40_v0  ;;  %v57_v4 = vld [vmem:[#allocation5 + $0x8] sm:$0xff]  ;;  %v58_v5 = vld [vmem:[#allocation5 + $0x10] sm:$0xff]  ;;  %s189_s6 = sshll.u32 %s347_s1, 4  ;;  %s190_s6 = int_to_ptr.vmem [resolvable:$true] %s189_s6 }
  0x28   :  { %v72_v3 = vmul.f32 0.5, %v56_v1  ;;  %v73_v6 = vmul.f32 0.5, %v57_v4  ;;  %209 = vtanh.f32 %v41_v2  ;;  %v74_v7 = vmul.f32 0.5, %v58_v5  ;;  %v59_v8 = vld [vmem:[#allocation5 + $0x18] sm:$0xff]  ;;  %v42_v9 = vld [vmem:[#allocation2 + $0x10] sm:$0xff]  ;;  %v60_v11 = vld [vmem:[#allocation5 + $0x20] sm:$0xff]  ;;  %p320_p3 = scmp.lt.s32.totalorder %s190_s6, %s190_s6 }
  0x29   :  { %v75_v10 = vmul.f32 0.5, %v59_v8  ;;  %v61_v12 = vld [vmem:[#allocation5 + $0x28] sm:$0xff]  ;;  %v43_v13 = vld [vmem:[#allocation2 + $0x18] sm:$0xff]  ;;  %v76_v14 = vmul.f32 0.5, %v60_v11  ;;  %v62_v15 = vld [vmem:[#allocation5 + $0x30] sm:$0xff]  ;;  %s315_s7 = scalar_lea.vmem %s190_s6, 2048 }
  0x2a   :  { %211 = vtanh.f32 %v72_v3  ;;  %v44_v16 = vld [vmem:[#allocation2 + $0x20] sm:$0xff]  ;;  %v77_v17 = vmul.f32 0.5, %v61_v12  ;;  %v63_v18 = vld [vmem:[#allocation5 + $0x38] sm:$0xff]  ;;  %v45_v19 = vld [vmem:[#allocation2 + $0x28] sm:$0xff]  ;;  %v78_v20 = vmul.f32 0.5, %v62_v15  ;;  %p316_p2 = scmp.ne.s32.totalorder %s190_s6, %s315_s7  ;;  %p321_p4 = scmp.lt.s32.totalorder %s315_s7, %s315_s7 }
  0x2b   :  { %213 = vtanh.f32 %v73_v6  ;;  %v64_v21 = vld [vmem:[#allocation5 + $0x40] sm:$0xff]  ;;  %v46_v23 = vld [vmem:[#allocation2 + $0x30] sm:$0xff]  ;;  %v79_v24 = vmul.f32 0.5, %v63_v18  ;;  %v65_v26 = vld [vmem:[#allocation5 + $0x48] sm:$0xff] }
  0x2c   :  { %215 = vtanh.f32 %v74_v7  ;;  %v47_v28 = vld [vmem:[#allocation2 + $0x38] sm:$0xff]  ;;  %v80_v29 = vmul.f32 0.5, %v64_v21  ;;  %v66_v32 = vld [vmem:[#allocation5 + $0x50] sm:$0xff]  ;;  %v48_v35 = vld [vmem:[#allocation2 + $0x40] sm:$0xff]  ;;  %v81_v36 = vmul.f32 0.5, %v65_v26  ;;  %p322_p5 = por %p321_p4, %p320_p3 }
  0x2d   :  { %217 = vtanh.f32 %v42_v9  ;;  %v67_v40 = vld [vmem:[#allocation5 + $0x58] sm:$0xff]  ;;  %v49_v43 = vld [vmem:[#allocation2 + $0x48] sm:$0xff]  ;;  %v82_v44 = vmul.f32 0.5, %v66_v32  ;;  %v68_v49 = vld [vmem:[#allocation5 + $0x60] sm:$0xff] }
  0x2e   :  { %219 = vtanh.f32 %v75_v10  ;;  %v50_v52 = vld [vmem:[#allocation2 + $0x50] sm:$0xff]  ;;  %v83_v53 = vmul.f32 0.5, %v67_v40  ;;  %v69_v58 = vld [vmem:[#allocation5 + $0x68] sm:$0xff]  ;;  %v51_v60 = vld [vmem:[#allocation2 + $0x58] sm:$0xff]  ;;  %v84_v61 = vmul.f32 0.5, %v68_v49  ;;  %p323_p6 = pnand %p322_p5, %p316_p2 }
  0x2f   :  { %221 = vtanh.f32 %v43_v13  ;;  %v70_v2 = vld [vmem:[#allocation5 + $0x70] sm:$0xff]  ;;  %v52_v4 = vld [vmem:[#allocation2 + $0x60] sm:$0xff]  ;;  %v85_v5 = vmul.f32 0.5, %v69_v58  ;;  %v71_v10 = vld [vmem:[#allocation5 + $0x78] sm:$0xff] }
  0x30   :  { %223 = vtanh.f32 %v76_v14  ;;  %v53_v12 = vld [vmem:[#allocation2 + $0x68] sm:$0xff]  ;;  %v86_v13 = vmul.f32 0.5, %v70_v2 }
  0x31   :  { %225 = vtanh.f32 %v44_v16  ;;  %v208_v22 = vpop.eup %207 }
  0x32   :  { %227 = vtanh.f32 %v77_v17  ;;  %v210_v25 = vpop.eup %209 }
  0x33   :  { %229 = vtanh.f32 %v45_v19  ;;  %v54_v19 = vld [vmem:[#allocation2 + $0x70] sm:$0xff] }
  0x34   :  { %v212_v27 = vpop.eup %211  ;;  %231 = vtanh.f32 %v78_v20  ;;  %v87_v20 = vmul.f32 0.5, %v71_v10 }
  0x35   :  { %v214_v30 = vpop.eup %213  ;;  %v104_v31 = vadd.f32 1.0, %v212_v27  ;;  %233 = vtanh.f32 %v46_v23 }
  0x36   :  { %v216_v33 = vpop.eup %215  ;;  %v105_v34 = vadd.f32 1.0, %v214_v30  ;;  %235 = vtanh.f32 %v79_v24  ;;  %v55_v30 = vld [vmem:[#allocation2 + $0x78] sm:$0xff] }
  0x37   :  { %v218_v37 = vpop.eup %217  ;;  %v120_v38 = vmul.f32 0.5, %v104_v31  ;;  %v106_v39 = vadd.f32 1.0, %v216_v33  ;;  %237 = vtanh.f32 %v47_v28 }
  0x38   :  { %v220_v41 = vpop.eup %219  ;;  %v121_v42 = vmul.f32 0.5, %v105_v34  ;;  %239 = vtanh.f32 %v80_v29 }
  0x39   :  { %v222_v45 = vpop.eup %221  ;;  %v152_v46 = vmul.f32 %v208_v22, %v120_v38  ;;  %v122_v47 = vmul.f32 0.5, %v106_v39  ;;  %v107_v48 = vadd.f32 1.0, %v220_v41  ;;  %241 = vtanh.f32 %v48_v35 }
  0x3a   :  { %v224_v50 = vpop.eup %223  ;;  %v153_v51 = vmul.f32 %v210_v25, %v121_v42  ;;  %243 = vtanh.f32 %v81_v36 }
  0x3b   :  { %v226_v54 = vpop.eup %225  ;;  %168 = vst [vmem:[#allocation7] sm:$0xff] %v152_v46  ;;  %v154_v55 = vmul.f32 %v218_v37, %v122_v47  ;;  %v123_v56 = vmul.f32 0.5, %v107_v48  ;;  %v108_v57 = vadd.f32 1.0, %v224_v50  ;;  %245 = vtanh.f32 %v49_v43 }
  0x3c   :  { %v228_v59 = vpop.eup %227  ;;  %169 = vst [vmem:[#allocation7 + $0x8] sm:$0xff] %v153_v51  ;;  %247 = vtanh.f32 %v82_v44 }
  0x3d   :  { %v230_v62 = vpop.eup %229  ;;  %170 = vst [vmem:[#allocation7 + $0x10] sm:$0xff] %v154_v55  ;;  %v155_v63 = vmul.f32 %v222_v45, %v123_v56  ;;  %v124_v0 = vmul.f32 0.5, %v108_v57  ;;  %v109_v1 = vadd.f32 1.0, %v228_v59  ;;  %249 = vtanh.f32 %v50_v52 }
  0x3e   :  { %v232_v3 = vpop.eup %231  ;;  %251 = vtanh.f32 %v83_v53 }
  0x3f   :  { %v234_v6 = vpop.eup %233  ;;  %171 = vst [vmem:[#allocation7 + $0x18] sm:$0xff] %v155_v63  ;;  %v156_v7 = vmul.f32 %v226_v54, %v124_v0  ;;  %v125_v8 = vmul.f32 0.5, %v109_v1  ;;  %v110_v9 = vadd.f32 1.0, %v232_v3  ;;  %253 = vtanh.f32 %v51_v60 }
  0x40   :  { %v236_v11 = vpop.eup %235  ;;  %255 = vtanh.f32 %v84_v61 }
  0x41   :  { %v238_v14 = vpop.eup %237  ;;  %172 = vst [vmem:[#allocation7 + $0x20] sm:$0xff] %v156_v7  ;;  %v157_v15 = vmul.f32 %v230_v62, %v125_v8  ;;  %v126_v16 = vmul.f32 0.5, %v110_v9  ;;  %v111_v17 = vadd.f32 1.0, %v236_v11  ;;  %257 = vtanh.f32 %v52_v4 }
  0x42   :  { %v240_v18 = vpop.eup %239  ;;  %259 = vtanh.f32 %v85_v5 }
  0x43   :  { %v242_v21 = vpop.eup %241  ;;  %173 = vst [vmem:[#allocation7 + $0x28] sm:$0xff] %v157_v15  ;;  %v158_v22 = vmul.f32 %v234_v6, %v126_v16  ;;  %v127_v23 = vmul.f32 0.5, %v111_v17  ;;  %v112_v24 = vadd.f32 1.0, %v240_v18  ;;  %261 = vtanh.f32 %v53_v12 }
  0x44   :  { %v244_v25 = vpop.eup %243  ;;  %263 = vtanh.f32 %v86_v13 }
  0x45   :  { %v246_v26 = vpop.eup %245  ;;  %174 = vst [vmem:[#allocation7 + $0x30] sm:$0xff] %v158_v22  ;;  %v159_v27 = vmul.f32 %v238_v14, %v127_v23  ;;  %v128_v28 = vmul.f32 0.5, %v112_v24  ;;  %v113_v29 = vadd.f32 1.0, %v244_v25  ;;  %265 = vtanh.f32 %v54_v19 }
  0x46   :  { %v248_v31 = vpop.eup %247  ;;  %267 = vtanh.f32 %v87_v20 }
  0x47   :  { %v250_v32 = vpop.eup %249  ;;  %175 = vst [vmem:[#allocation7 + $0x38] sm:$0xff] %v159_v27  ;;  %v160_v33 = vmul.f32 %v242_v21, %v128_v28  ;;  %v129_v34 = vmul.f32 0.5, %v113_v29  ;;  %v114_v35 = vadd.f32 1.0, %v248_v31  ;;  %269 = vtanh.f32 %v55_v30 }
  0x48   :  { %v252_v36 = vpop.eup %251 }
  0x49   :  { %v254_v37 = vpop.eup %253  ;;  %176 = vst [vmem:[#allocation7 + $0x40] sm:$0xff] %v160_v33  ;;  %v161_v38 = vmul.f32 %v246_v26, %v129_v34  ;;  %v130_v39 = vmul.f32 0.5, %v114_v35  ;;  %v115_v40 = vadd.f32 1.0, %v252_v36 }
  0x4a   :  { %v256_v41 = vpop.eup %255 }
  0x4b   :  { %v258_v42 = vpop.eup %257  ;;  %177 = vst [vmem:[#allocation7 + $0x48] sm:$0xff] %v161_v38  ;;  %v162_v43 = vmul.f32 %v250_v32, %v130_v39  ;;  %v131_v44 = vmul.f32 0.5, %v115_v40  ;;  %v116_v45 = vadd.f32 1.0, %v256_v41 }
  0x4c   :  { %v260_v46 = vpop.eup %259 }
  0x4d   :  { %v262_v47 = vpop.eup %261  ;;  %178 = vst [vmem:[#allocation7 + $0x50] sm:$0xff] %v162_v43  ;;  %v163_v48 = vmul.f32 %v254_v37, %v131_v44  ;;  %v132_v49 = vmul.f32 0.5, %v116_v45  ;;  %v117_v50 = vadd.f32 1.0, %v260_v46 }
  0x4e   :  { %v264_v51 = vpop.eup %263 }
  0x4f   :  { %v266_v52 = vpop.eup %265  ;;  %179 = vst [vmem:[#allocation7 + $0x58] sm:$0xff] %v163_v48  ;;  %v164_v53 = vmul.f32 %v258_v42, %v132_v49  ;;  %v133_v54 = vmul.f32 0.5, %v117_v50  ;;  %v118_v55 = vadd.f32 1.0, %v264_v51 }
  0x50   :  { %v268_v56 = vpop.eup %267 }
  0x51   :  { %180 = vst [vmem:[#allocation7 + $0x60] sm:$0xff] %v164_v53  ;;  %v165_v57 = vmul.f32 %v262_v47, %v133_v54  ;;  %v134_v58 = vmul.f32 0.5, %v118_v55  ;;  %v119_v59 = vadd.f32 1.0, %v268_v56  ;;  %v270_v60 = vpop.eup %269 }
  0x53   :  { %181 = vst [vmem:[#allocation7 + $0x68] sm:$0xff] %v165_v57  ;;  %v166_v61 = vmul.f32 %v266_v52, %v134_v58  ;;  %v135_v62 = vmul.f32 0.5, %v119_v59 }
  0x55   :  { %182 = vst [vmem:[#allocation7 + $0x70] sm:$0xff] %v166_v61  ;;  %v167_v63 = vmul.f32 %v270_v60, %v135_v62 }
  0x57   :  { %183 = vst [vmem:[#allocation7 + $0x78] sm:$0xff] %v167_v63 }
  0x58   :  { %326 = shalt.err (!%p323_p6)
}
  0x59   :  { %s327_s10 = scalar_lea.hbm %s410_s2, 2048 }
  0x5a   :  { %p328_p7 = scmp.ne.s32.totalorder %s410_s2, %s327_s10  ;;  %p331_p8 = scmp.lt.u32.totalorder %s327_s10, %s410_s2 }
  0x5c   :  { %p333_p9 = pnand %p331_p8, %p328_p7 }
  0x5e   :  { %336 = shalt.err (!%p333_p9)
}
  0x5f   :  { %195 = dma.vmem_to_hbm [thread:$0]  %s190_s6, 2048, %s410_s2, [#allocation4], %s344_s19, %s344_s19, %s345_s20  }
  0x60   :  { %341 = dma.done.wait [#allocation4], 2048  }
  0x61   :  { %342 = vsyncadd [#allocation4], 4294965248 }
  0x62   :  { %199 = vsyncpa [#allocation3], 1 }
  0x63   :  { %200 = vsyncpa [#allocation6], 1 }
  0x64   :  { %201 = vsyncpa [#allocation4], 1 }

</bundles_post_ra>
